<compile_context>
chip_gen: v5e
topology: v5e:2x2
jax: 0.10.0
libtpu: 0.0.40
codegen_flags: <defaults>
</compile_context>

<pallas_src>
import functools

import jax
import jax.numpy as jnp
from jax import lax
from jax.experimental import pallas as pl
from jax.experimental.pallas import tpu as pltpu

LN_EPS = 1e-5            # torch.nn.LayerNorm default eps
_INV_SQRT2 = 0.7071067811865476


def _cdiv(a, b):
    return (a + b - 1) // b


def _round_up(x, m):
    return (x + m - 1) // m * m


# ----------------------------------------------------------------------------
# One-time hardware / feature detection (import time, never on the hot path).
# ----------------------------------------------------------------------------
def _probe_buffered():
    """Tiny compile probing pipeline_mode=pl.Buffered support on this JAX/TPU."""
    try:
        spec = pl.BlockSpec((8, 128), lambda i: (0, 0), pipeline_mode=pl.Buffered(1))

        def _k(a_ref, o_ref):
            o_ref[...] = a_ref[...] * 2.0

        f = pl.pallas_call(
            _k,
            out_shape=jax.ShapeDtypeStruct((16, 128), jnp.float32),
            grid_spec=pltpu.PrefetchScalarGridSpec(
                num_scalar_prefetch=0,
                grid=(2,),
                in_specs=[spec],
                out_specs=pl.BlockSpec((8, 128), lambda i: (i, 0)),
            ),
        )
        jax.block_until_ready(f(jnp.zeros((8, 128), jnp.float32)))
        return True
    except Exception:
        return False


def _detect_hw():
    vmem_cap = 128 * 1024 * 1024   # v5e / v6e default
    num_tc = 1
    tm_default = 256               # 256x256 MXU on v6e / v7x
    kind = ""
    try:
        kind = jax.devices()[0].device_kind.lower()
    except Exception:
        pass
    if ("v5 lite" in kind) or ("v5e" in kind) or ("v5lite" in kind):
        tm_default = 128           # 4x128x128 MXU, 1 vst slot: smaller epilogue slabs
    if ("v7" in kind) or ("v4" in kind) or ("v5p" in kind):
        num_tc = 2                 # dual TensorCore / megacore
    if "v7" in kind:
        vmem_cap = 64 * 1024 * 1024
    try:
        info = pltpu.get_tpu_info()
        vmem_cap = int(getattr(info, "vmem_capacity_bytes", vmem_cap))
    except Exception:
        pass
    return vmem_cap, num_tc, tm_default


_HAS_BUFFERED = _probe_buffered()
_VMEM_CAP, _NUM_TC, _TM_DEFAULT = _detect_hw()


# ----------------------------------------------------------------------------
# Kernel
# ----------------------------------------------------------------------------
def _erf(x):
    # Abramowitz & Stegun 7.1.26 rational approximation, |abs err| <= 1.5e-7,
    # built only from exp (EUP) + VPU ops so it always lowers in Mosaic.
    # TODO(synk): replace with lax.erf if/when it has a Mosaic lowering.
    p = jnp.float32(0.3275911)
    a1 = jnp.float32(0.254829592)
    a2 = jnp.float32(-0.284496736)
    a3 = jnp.float32(1.421413741)
    a4 = jnp.float32(-1.453152027)
    a5 = jnp.float32(1.061405429)
    ax = jnp.abs(x)
    t = 1.0 / (1.0 + p * ax)
    poly = ((((a5 * t + a4) * t + a3) * t + a2) * t + a1) * t
    y = 1.0 - poly * jnp.exp(-ax * ax)
    return jnp.where(x < 0, -y, y)


def _head_transform_kernel(x_ref, w_ref, p_ref, o_ref):
    # x_ref: (tm, H) row tile in native dtype.
    # w_ref: (H, H) dense weight pre-transposed to [in, out] (native dtype).
    # p_ref: (3, H) f32 = [bias; ln_gamma; ln_beta], resident.

    # Dense: contract x's last dim with w's FIRST dim (weight already [in, out])
    # -> no in-kernel transpose; MXU accumulates in f32, operands stay native.
    y = jnp.dot(x_ref[...], w_ref[...], preferred_element_type=jnp.float32)
    p = p_ref[...]
    y = y + p[0:1, :]

    # Exact GELU (nn.GELU default, approximate='none').
    y = 0.5 * y * (1.0 + _erf(y * jnp.float32(_INV_SQRT2)))

    # LayerNorm over the hidden axis: centered two-pass variance (matches torch,
    # avoids E[y^2]-E[y]^2 cancellation).
    inv_h = jnp.float32(1.0 / y.shape[-1])
    mean = jnp.sum(y, axis=-1, keepdims=True) * inv_h
    c = y - mean
    var = jnp.sum(c * c, axis=-1, keepdims=True) * inv_h
    out = c * lax.rsqrt(var + jnp.float32(LN_EPS)) * p[1:2, :] + p[2:3, :]

    o_ref[...] = out.astype(o_ref.dtype)


# ----------------------------------------------------------------------------
# pallas_call builder (cached + jitted; single variant, no per-call try/except)
# ----------------------------------------------------------------------------
@functools.lru_cache(maxsize=64)
def _build_call(rows, H, tm, x_dtype_str, w_dtype_str, vmem_limit_bytes):
    del w_dtype_str  # part of the cache key only (jit re-traces on dtype anyway)
    resident_kw = {"pipeline_mode": pl.Buffered(1)} if _HAS_BUFFERED else {}
    call = pl.pallas_call(
        _head_transform_kernel,
        out_shape=jax.ShapeDtypeStruct((rows, H), jnp.dtype(x_dtype_str)),
        grid_spec=pltpu.PrefetchScalarGridSpec(
            num_scalar_prefetch=0,
            grid=(_cdiv(rows, tm),),
            in_specs=[
                pl.BlockSpec((tm, H), lambda i: (i, 0)),                 # x row tile
                pl.BlockSpec((H, H), lambda i: (0, 0), **resident_kw),   # weight (resident)
                pl.BlockSpec((3, H), lambda i: (0, 0), **resident_kw),   # bias/gamma/beta
            ],
            out_specs=pl.BlockSpec((tm, H), lambda i: (i, 0)),
        ),
        compiler_params=pltpu.CompilerParams(
            dimension_semantics=("parallel",),
            vmem_limit_bytes=int(vmem_limit_bytes),
        ),
    )
    return jax.jit(call)


def bert_prediction_head_transform(x, w, b, gamma, beta, *, tm=None):
    """Fused BertPredictionHeadTransform forward.

    x: [B, S, H]; w: [H, H] (PyTorch Linear [out, in]); b, gamma, beta: [H].
    tm: row tile; default is generation-aware (256 on v6e/v7x, 128 on v5e).
    """
    B, S, H = x.shape
    rows = B * S

    if tm is None:
        tm = _TM_DEFAULT
    # Clamp to the row count (8-row sublane quantum); no divisibility required.
    tm = max(8, min(_round_up(tm, 8), _round_up(rows, 8)))
    # On dual-TensorCore chips make sure the row grid has >= num_tc steps so
    # dimension_semantics=("parallel",) can shard it; otherwise one core idles.
    if _NUM_TC > 1 and _cdiv(rows, tm) < _NUM_TC and rows > 8:
        tm = max(8, _round_up(_cdiv(rows, _NUM_TC), 8))

    x2 = x.reshape(rows, H)
    # Weight as [in, out]: the kernel contracts (1)x(0) on the MXU directly.
    # Callers with static weights should hoist/cache this transpose.
    wt = jnp.transpose(w)
    params = jnp.stack([b, gamma, beta]).astype(jnp.float32)  # (3, H) resident

    # VMEM budget: resident weight (+params) buffers, double-buffered in/out row
    # tiles, and the f32 matmul-result / epilogue temps; capped at 75% of the
    # detected per-core VMEM capacity (64 MiB on v7x).
    x_item = jnp.dtype(x.dtype).itemsize
    w_item = jnp.dtype(w.dtype).itemsize
    w_bufs = 1 if _HAS_BUFFERED else 2
    est = (w_bufs * H * H * w_item            # resident weight
           + 2 * 2 * tm * H * x_item          # double-buffered x / out row tiles
           + w_bufs * 8 * H * 4               # (3,H) params, sublane-padded to 8
           + 3 * tm * H * 4)                  # f32 MXU result + epilogue temps
    vmem_limit = int(min(0.75 * _VMEM_CAP, max(32 * 1024 * 1024, 2 * est)))

    out2 = _build_call(rows, H, tm, str(jnp.dtype(x.dtype)),
                       str(jnp.dtype(w.dtype)), vmem_limit)(x2, wt, params)
    return out2.reshape(B, S, H)


def _reference(x, w, b, gamma, beta):
    y = x @ w.T + b
    y = 0.5 * y * (1.0 + lax.erf(y / jnp.sqrt(2.0)))     # exact GELU
    mu = jnp.mean(y, axis=-1, keepdims=True)
    var = jnp.mean((y - mu) ** 2, axis=-1, keepdims=True)
    return (y - mu) / jnp.sqrt(var + LN_EPS) * gamma + beta


if __name__ == "__main__":
    B, S, H = 2, 8, 32
    key = jax.random.PRNGKey(0)
    kx, kw, kb, kg, kbeta = jax.random.split(key, 5)

    x = jax.random.normal(kx, (B, S, H), dtype=jnp.float32)
    # Deterministic synthetic params (shapes per nn.Linear(H, H) / nn.LayerNorm(H)).
    w = jax.random.normal(kw, (H, H), dtype=jnp.float32) * (1.0 / jnp.sqrt(H))
    b = jax.random.normal(kb, (H,), dtype=jnp.float32) * 0.02
    gamma = 1.0 + 0.1 * jax.random.normal(kg, (H,), dtype=jnp.float32)
    beta = 0.1 * jax.random.normal(kbeta, (H,), dtype=jnp.float32)

    out = jax.block_until_ready(bert_prediction_head_transform(x, w, b, gamma, beta))
    ref = _reference(x, w, b, gamma, beta)
    assert out.shape == (B, S, H)
    assert jnp.allclose(out, ref, atol=1e-4, rtol=1e-4), "mismatch vs reference"

    # Ragged row count exercises the masked partial-last-block path (rows=5, tm=8).
    x_r = jax.random.normal(kx, (1, 5, H), dtype=jnp.float32)
    out_r = jax.block_until_ready(
        bert_prediction_head_transform(x_r, w, b, gamma, beta))
    ref_r = _reference(x_r, w, b, gamma, beta)
    assert out_r.shape == (1, 5, H)
    assert jnp.allclose(out_r, ref_r, atol=1e-4, rtol=1e-4), "mismatch (ragged rows)"

    print("KERNEL_OK")
</pallas_src>

<mosaic_0001>
module attributes {stable_mosaic.version = 11 : i64} {
  func.func @_k(%arg0: i32, %arg1: memref<8x128xf32, #tpu.memory_space<vmem>>, %arg2: memref<8x128xf32, #tpu.memory_space<vmem>>) attributes {dimension_semantics = [#tpu.dimension_semantics<arbitrary>], iteration_bounds = array<i64: 2>, scalar_prefetch = 0 : i64, scratch_operands = 0 : i64, tpu.core_type = #tpu.core_type<tc>, window_params = [{pipeline_mode = #tpu.pipeline_mode<synchronous>, transform_indices = @transform_0, window_bounds = array<i64: 8, 128>}, {transform_indices = @transform_1, window_bounds = array<i64: 8, 128>}]} {
    %c0 = arith.constant 0 : index
    %c0_0 = arith.constant 0 : index
    %0 = vector.load %arg1[%c0, %c0_0] : memref<8x128xf32, #tpu.memory_space<vmem>>, vector<8x128xf32>
    %cst = arith.constant 2.000000e+00 : f32
    %1 = vector.broadcast %cst : f32 to vector<8x128xf32>
    %2 = arith.mulf %0, %1 : vector<8x128xf32>
    %c0_1 = arith.constant 0 : index
    %c0_2 = arith.constant 0 : index
    %3 = vector.load %arg2[%c0_1, %c0_2] : memref<8x128xf32, #tpu.memory_space<vmem>>, vector<8x128xf32>
    tpu.vector_store %arg2[%c0_1, %c0_2], %2 {strides = array<i32>} : memref<8x128xf32, #tpu.memory_space<vmem>>, vector<8x128xf32>,
    return
  }
  func.func @transform_0(%arg0: i32) -> (i32, i32) {
    %c0_i32 = arith.constant 0 : i32
    %c0_i32_0 = arith.constant 0 : i32
    %c0_i32_1 = arith.constant 0 : i32
    return %c0_i32, %c0_i32_0 : i32, i32
  }
  func.func @transform_1(%arg0: i32) -> (i32, i32) {
    %c0_i32 = arith.constant 0 : i32
    %c0_i32_0 = arith.constant 0 : i32
    return %arg0, %c0_i32 : i32, i32
  }
}

module attributes {stable_mosaic.version = 11 : i64} {
  func.func @_head_transform_kernel(%arg0: i32, %arg1: memref<16x32xf32, #tpu.memory_space<vmem>>, %arg2: memref<32x32xf32, #tpu.memory_space<vmem>>, %arg3: memref<3x32xf32, #tpu.memory_space<vmem>>, %arg4: memref<16x32xf32, #tpu.memory_space<vmem>>) attributes {dimension_semantics = [#tpu.dimension_semantics<parallel>], iteration_bounds = array<i64: 1>, scalar_prefetch = 0 : i64, scratch_operands = 0 : i64, tpu.core_type = #tpu.core_type<tc>, window_params = [{transform_indices = @transform_0, window_bounds = array<i64: 16, 32>}, {pipeline_mode = #tpu.pipeline_mode<synchronous>, transform_indices = @transform_1, window_bounds = array<i64: 32, 32>}, {pipeline_mode = #tpu.pipeline_mode<synchronous>, transform_indices = @transform_2, window_bounds = array<i64: 3, 32>}, {transform_indices = @transform_3, window_bounds = array<i64: 16, 32>}]} {
    %c0 = arith.constant 0 : index
    %c0_0 = arith.constant 0 : index
    %0 = vector.load %arg1[%c0, %c0_0] : memref<16x32xf32, #tpu.memory_space<vmem>>, vector<16x32xf32>
    %c0_1 = arith.constant 0 : index
    %c0_2 = arith.constant 0 : index
    %1 = vector.load %arg2[%c0_1, %c0_2] : memref<32x32xf32, #tpu.memory_space<vmem>>, vector<32x32xf32>
    %cst = arith.constant dense<0.000000e+00> : vector<16x32xf32>
    %2 = tpu.matmul %0, %1, %cst {dimension_numbers = #tpu.dot_dimension_numbers<[1], [0], [0], [1], [0, 0, 1, 1], [], []>} : vector<16x32xf32>, vector<32x32xf32>, vector<16x32xf32> -> vector<16x32xf32>
    %c0_3 = arith.constant 0 : index
    %c0_4 = arith.constant 0 : index
    %3 = vector.load %arg3[%c0_3, %c0_4] : memref<3x32xf32, #tpu.memory_space<vmem>>, vector<3x32xf32>
    %4 = vector.extract_strided_slice %3 {offsets = [0, 0], sizes = [1, 32], strides = [1, 1]} : vector<3x32xf32> to vector<1x32xf32>
    %5 = vector.broadcast %4 : vector<1x32xf32> to vector<16x32xf32>
    %6 = arith.addf %2, %5 : vector<16x32xf32>
    %cst_5 = arith.constant 5.000000e-01 : f32
    %7 = vector.broadcast %cst_5 : f32 to vector<16x32xf32>
    %8 = arith.mulf %7, %6 : vector<16x32xf32>
    %cst_6 = arith.constant 0.707106769 : f32
    %9 = vector.broadcast %cst_6 : f32 to vector<16x32xf32>
    %10 = arith.mulf %6, %9 : vector<16x32xf32>
    %11 = math.absf %10 : vector<16x32xf32>
    %cst_7 = arith.constant 0.327591091 : f32
    %12 = vector.broadcast %cst_7 : f32 to vector<16x32xf32>
    %13 = arith.mulf %12, %11 : vector<16x32xf32>
    %cst_8 = arith.constant 1.000000e+00 : f32
    %14 = vector.broadcast %cst_8 : f32 to vector<16x32xf32>
    %15 = arith.addf %14, %13 : vector<16x32xf32>
    %cst_9 = arith.constant 1.000000e+00 : f32
    %16 = vector.broadcast %cst_9 : f32 to vector<16x32xf32>
    %17 = arith.divf %16, %15 : vector<16x32xf32>
    %cst_10 = arith.constant 1.06140542 : f32
    %18 = vector.broadcast %cst_10 : f32 to vector<16x32xf32>
    %19 = arith.mulf %18, %17 : vector<16x32xf32>
    %cst_11 = arith.constant -1.45315206 : f32
    %20 = vector.broadcast %cst_11 : f32 to vector<16x32xf32>
    %21 = arith.addf %19, %20 : vector<16x32xf32>
    %22 = arith.mulf %21, %17 : vector<16x32xf32>
    %cst_12 = arith.constant 1.42141378 : f32
    %23 = vector.broadcast %cst_12 : f32 to vector<16x32xf32>
    %24 = arith.addf %22, %23 : vector<16x32xf32>
    %25 = arith.mulf %24, %17 : vector<16x32xf32>
    %cst_13 = arith.constant -0.284496725 : f32
    %26 = vector.broadcast %cst_13 : f32 to vector<16x32xf32>
    %27 = arith.addf %25, %26 : vector<16x32xf32>
    %28 = arith.mulf %27, %17 : vector<16x32xf32>
    %cst_14 = arith.constant 0.254829586 : f32
    %29 = vector.broadcast %cst_14 : f32 to vector<16x32xf32>
    %30 = arith.addf %28, %29 : vector<16x32xf32>
    %31 = arith.mulf %30, %17 : vector<16x32xf32>
    %cst_15 = arith.constant 0.000000e+00 : f32
    %32 = vector.broadcast %cst_15 : f32 to vector<16x32xf32>
    %33 = arith.subf %32, %11 : vector<16x32xf32>
    %34 = arith.mulf %33, %11 : vector<16x32xf32>
    %35 = math.exp %34 : vector<16x32xf32>
    %36 = arith.mulf %31, %35 : vector<16x32xf32>
    %cst_16 = arith.constant 1.000000e+00 : f32
    %37 = vector.broadcast %cst_16 : f32 to vector<16x32xf32>
    %38 = arith.subf %37, %36 : vector<16x32xf32>
    %cst_17 = arith.constant 0.000000e+00 : f32
    %39 = vector.broadcast %cst_17 : f32 to vector<16x32xf32>
    %40 = arith.cmpf olt, %10, %39 : vector<16x32xf32>
    %cst_18 = arith.constant 0.000000e+00 : f32
    %41 = vector.broadcast %cst_18 : f32 to vector<16x32xf32>
    %42 = arith.subf %41, %38 : vector<16x32xf32>
    %43 = arith.select %40, %42, %38 : vector<16x32xi1>, vector<16x32xf32>
    %cst_19 = arith.constant 1.000000e+00 : f32
    %44 = vector.broadcast %cst_19 : f32 to vector<16x32xf32>
    %45 = arith.addf %44, %43 : vector<16x32xf32>
    %46 = arith.mulf %8, %45 : vector<16x32xf32>
    %cst_20 = arith.constant dense<0.000000e+00> : vector<16xf32>
    %47 = vector.multi_reduction <add>, %46, %cst_20 [1] : vector<16x32xf32> to vector<16xf32>
    %48 = vector.shape_cast %47 : vector<16xf32> to vector<16x1xf32>
    %cst_21 = arith.constant 3.125000e-02 : f32
    %49 = vector.broadcast %cst_21 : f32 to vector<16x1xf32>
    %50 = arith.mulf %48, %49 : vector<16x1xf32>
    %51 = vector.broadcast %50 : vector<16x1xf32> to vector<16x32xf32>
    %52 = arith.subf %46, %51 : vector<16x32xf32>
    %53 = arith.mulf %52, %52 : vector<16x32xf32>
    %cst_22 = arith.constant dense<0.000000e+00> : vector<16xf32>
    %54 = vector.multi_reduction <add>, %53, %cst_22 [1] : vector<16x32xf32> to vector<16xf32>
    %55 = vector.shape_cast %54 : vector<16xf32> to vector<16x1xf32>
    %cst_23 = arith.constant 3.125000e-02 : f32
    %56 = vector.broadcast %cst_23 : f32 to vector<16x1xf32>
    %57 = arith.mulf %55, %56 : vector<16x1xf32>
    %cst_24 = arith.constant 9.99999974E-6 : f32
    %58 = vector.broadcast %cst_24 : f32 to vector<16x1xf32>
    %59 = arith.addf %57, %58 : vector<16x1xf32>
    %60 = math.rsqrt %59 : vector<16x1xf32>
    %61 = vector.broadcast %60 : vector<16x1xf32> to vector<16x32xf32>
    %62 = arith.mulf %52, %61 : vector<16x32xf32>
    %63 = vector.extract_strided_slice %3 {offsets = [1, 0], sizes = [1, 32], strides = [1, 1]} : vector<3x32xf32> to vector<1x32xf32>
    %64 = vector.broadcast %63 : vector<1x32xf32> to vector<16x32xf32>
    %65 = arith.mulf %62, %64 : vector<16x32xf32>
    %66 = vector.extract_strided_slice %3 {offsets = [2, 0], sizes = [1, 32], strides = [1, 1]} : vector<3x32xf32> to vector<1x32xf32>
    %67 = vector.broadcast %66 : vector<1x32xf32> to vector<16x32xf32>
    %68 = arith.addf %65, %67 : vector<16x32xf32>
    %c0_25 = arith.constant 0 : index
    %c0_26 = arith.constant 0 : index
    %69 = vector.load %arg4[%c0_25, %c0_26] : memref<16x32xf32, #tpu.memory_space<vmem>>, vector<16x32xf32>
    tpu.vector_store %arg4[%c0_25, %c0_26], %68 {strides = array<i32>} : memref<16x32xf32, #tpu.memory_space<vmem>>, vector<16x32xf32>,
    return
  }
  func.func @transform_0(%arg0: i32) -> (i32, i32) {
    %c0_i32 = arith.constant 0 : i32
    %c0_i32_0 = arith.constant 0 : i32
    return %arg0, %c0_i32 : i32, i32
  }
  func.func @transform_1(%arg0: i32) -> (i32, i32) {
    %c0_i32 = arith.constant 0 : i32
    %c0_i32_0 = arith.constant 0 : i32
    %c0_i32_1 = arith.constant 0 : i32
    return %c0_i32, %c0_i32_0 : i32, i32
  }
  func.func @transform_2(%arg0: i32) -> (i32, i32) {
    %c0_i32 = arith.constant 0 : i32
    %c0_i32_0 = arith.constant 0 : i32
    %c0_i32_1 = arith.constant 0 : i32
    return %c0_i32, %c0_i32_0 : i32, i32
  }
  func.func @transform_3(%arg0: i32) -> (i32, i32) {
    %c0_i32 = arith.constant 0 : i32
    %c0_i32_0 = arith.constant 0 : i32
    return %arg0, %c0_i32 : i32, i32
  }
}

</mosaic_0001>

<bundles_post_ra>
// kernel: tpu_custom_call.1
= control target key start
LH: loop header
LB: loop body
LE: loop exit
PB: predicated region body
PF: predicated region fallthrough
CT: control target
= control target key end

     0   :  { %6 = vsyncpa [#allocation3], 0  ;;  %s441_s0 = inlined_call_operand.hbm [shape: f32[8,128], index: 0, kind: input, shape index: {}]   ;;  %s442_s1 = inlined_call_operand.hbm [shape: f32[16,128], index: 1, kind: output, shape index: {}]  }
   0x1   :  { %7 = vsyncpa [#allocation4], 0 }
   0x2   :  { %9 = vsyncpa [#allocation4 + $0x1], 0  ;;  %s357_s6 = smov 0   ;;  %s359_s7 = smov 0  }
   0x3   :  { %s361_s8 = smov 0   ;;  %s363_s9 = smov 0  }
   0x4 LB: > { %s378_s10 = sadd.s32 4294967295, %s344_s9   ;;  %s188_s11 = sadd.s32 4294967294, %s344_s9   ;;  %s344_s9 = sphi %s363_s9, %s448_s9   ;;  %s340_s8 = sphi %s361_s8, %s447_s8   ;;  %s336_s7 = sphi %s359_s7, %s446_s7   ;;  %s332_s6 = sphi %s357_s6, %s445_s6  }
   0x5   : > { %s382_s12 = sadd.s32 1, %s344_s9   ;;  %s43_s13 = sadd.s32 1, %s340_s8 }
   0x6   : > { %s40_s14 = ssub.s32 %s344_s9, %s382_s12  ;;  %p53_p0 = scmp.ne.s32.totalorder %s340_s8, %s336_s7 }
   0x7   : > { %p41_p1 = scmp.eq.s32.totalorder %s40_s14, 0  ;;  %p54_p2 = scmp.eq.s32.totalorder %s378_s10, 1 }
   0x8   : > { %p59_p3 = scmp.ne.s32.totalorder %s336_s7, %s332_s6  ;;  %p60_p4 = scmp.eq.s32.totalorder %s188_s11, 1 }
   0x9   : > { %s393_s15 = scalar_select %p41_p1, %s340_s8, %s43_s13  }
   0xa   : > { %p395_p5 = por %p54_p2, %p53_p0  ;;  %p399_p6 = por %p60_p4, %p59_p3 }
   0xb   : > { %p189_p7 = scmp.ge.s32.totalorder %s344_s9, 1  ;;  %p67_p8 = scmp.lt.s32.totalorder %s344_s9, 3 }
   0xc   : > { %p212_p9 = scmp.eq.s32.totalorder %s378_s10, 0  ;;  %s79_s20 = sshll.u32 %s441_s0, 4  ;;  %s80_s20 = int_to_ptr.hbm [resolvable:$true] %s79_s20 }
   0xd   : > { %p68_p10 = pnand %p189_p7, %p67_p8  ;;  %s346_s21 = smov [#allocation2]  }
   0xe   : > { %s81_s22 = sshll.u32 %s346_s21, 4  ;;  %s82_s22 = int_to_ptr.vmem [resolvable:$true] %s81_s22 }
   0xf   : > { %p204_p11 = pneg %p68_p10  ;;  %94 = sbr.rel (%p68_p10) target bundleno = 37 (0x25), region = 24 }
  0x11   : > { %p205_p12 = pnand %p212_p9, %p204_p11 }
  0x13   : > { %207 = dma.hbm_to_vmem [thread:$0]  (!%p205_p12), %s80_s20, 128, %s82_s22, [#allocation3]  }
  0x14   : > { %323 = dma.done.wait (%p212_p9), [#allocation3], 128  }
  0x15   : > { %325 = vsyncadd (%p212_p9), [#allocation3], 4294967168  ;;  %s107_s23 = sand.u32 1, %s336_s7   ;;  %s195_s24 = sshll.u32 %s378_s10, 3  ;;  %v110_v0 = vld [vmem:[#allocation2] sm:$0xff] }
  0x16   : > { %s193_s25 = sshll.u32 %s107_s23, 3  ;;  %s124_s28 = scalar_lea.hbm %s442_s1, %s195_s24  ;;  %v111_v1 = vmul.f32 2.0, %v110_v0 }
  0x17   : > { %s109_s29 = scalar_lea.vmem [#allocation5], %s193_s25  ;;  %s128_s2 = sshll.u32 %s124_s28, 4  ;;  %s129_s2 = int_to_ptr.hbm [resolvable:$true] %s128_s2 }
  0x18   : > { %s126_s30 = sshll.u32 %s109_s29, 4  ;;  %112 = vst [vmem:[%s109_s29] sm:$0xff] %v111_v1  ;;  %s114_s3 = scalar_lea.sflag [#allocation4], %s107_s23  ;;  %s127_s30 = int_to_ptr.vmem [resolvable:$true] %s126_s30 }
  0x19   : > { %s292_s4 = sshra.s32 %s129_s2, 4  ;;  %s298_s13 = scalar_lea.hbm %s442_s1, 16  ;;  %s293_s4 = int_to_ptr.hbm [resolvable:$true] %s292_s4 }
  0x1a   : > { %s294_s5 = scalar_lea.hbm %s293_s4, 8  ;;  %p299_p2 = scmp.lt.s32.totalorder %s293_s4, %s442_s1 }
  0x1b   : > { %p295_p13 = scmp.ne.s32.totalorder %s293_s4, %s294_s5  ;;  %p300_p3 = scmp.lt.s32.totalorder %s298_s13, %s294_s5 }
  0x1d   : > { %p296_p0 = pnand %p295_p13, %p395_p5  ;;  %p301_p4 = por %p300_p3, %p299_p2 }
  0x1f   : > { %p297_p1 = pneg %p296_p0 }
  0x21   : > { %p302_p7 = pnand %p301_p4, %p297_p1 }
  0x23   : > { %305 = shalt.err (!%p302_p7)
}
  0x24   : > { %202 = dma.vmem_to_hbm [thread:$0]  (%p395_p5), %s127_s30, 128, %s129_s2, %s114_s3  }
  0x25 PF: > { %p214_p8 = scmp.ge.s32.totalorder %s344_s9, 2  ;;  %s140_s19 = sand.u32 1, %s332_s6  }
  0x26   : > { %s141_s20 = scalar_lea.sflag [#allocation4], %s140_s19 }
  0x27   : > { %p209_p9 = pnand %p214_p8, %p399_p6 }
  0x29   : > { %p210_p10 = pneg %p209_p9 }
  0x2b   : > { %327 = dma.done.wait (%p210_p10), %s141_s20, 128  }
  0x2c   : > { %329 = vsyncadd (%p210_p10), %s141_s20, 4294967168  ;;  %p12_p11 = scmp.ge.s32.totalorder %s382_s12, 4   ;;  %s445_s6 = smov %s336_s7 }
  0x2d   : > { %s446_s7 = smov %s340_s8  ;;  %s447_s8 = smov %s393_s15 }
  0x2e   : > { %s448_s9 = smov %s382_s12  ;;  %14 = sbr.rel (!%p12_p11) target bundleno = 4 (0x4), region = 61 }
  0x33   :  { %147 = vsyncpa [#allocation3], 1 }
  0x34   :  { %149 = vsyncpa [#allocation3 + $0x1], 1 }
  0x35   :  { %150 = vsyncpa [#allocation4], 1 }
  0x36   :  { %152 = vsyncpa [#allocation4 + $0x1], 1 }

// kernel: tpu_custom_call.1
= control target key start
LH: loop header
LB: loop body
LE: loop exit
PB: predicated region body
PF: predicated region fallthrough
CT: control target
= control target key end

     0   :  { %8 = vsyncpa [#allocation3], 0  ;;  %s452_s0 = inlined_call_operand.hbm [shape: f32[16,32], index: 0, kind: input, shape index: {}]   ;;  %s453_s1 = inlined_call_operand.hbm [shape: f32[32,32], index: 1, kind: input, shape index: {}]   ;;  %s454_s2 = inlined_call_operand.hbm [shape: f32[3,32], index: 2, kind: input, shape index: {}]   ;;  %s455_s3 = inlined_call_operand.hbm [shape: f32[16,32], index: 3, kind: output, shape index: {}]  }
   0x1   :  { %9 = vsyncpa [#allocation6], 0 }
   0x2   :  { %10 = vsyncpa [#allocation4], 0  ;;  %s28_s14 = sshll.u32 %s453_s1, 4  ;;  %s376_s15 = smov [#allocation5]   ;;  %s29_s14 = int_to_ptr.hbm [resolvable:$true] %s28_s14 }
   0x3   :  { %s30_s16 = sshll.u32 %s376_s15, 4  ;;  %s15_s19 = sshll.u32 %s452_s0, 4  ;;  %s31_s16 = int_to_ptr.vmem [resolvable:$true] %s30_s16  ;;  %s16_s19 = int_to_ptr.hbm [resolvable:$true] %s15_s19 }
   0x4   :  { %s377_s20 = smov 128   ;;  %s378_s21 = smov 8  }
   0x5   :  { %36 = dma.hbm_to_vmem [thread:$0]  %s29_s14, 512, %s31_s16, [#allocation6], %s377_s20, %s377_s20, %s378_s21  }
   0x6   :  { %s379_s22 = smov [#allocation2]   ;;  %s42_s1 = sshll.u32 %s454_s2, 4  ;;  %s43_s1 = int_to_ptr.hbm [resolvable:$true] %s42_s1 }
   0x7   :  { %s17_s23 = sshll.u32 %s379_s22, 4  ;;  %s380_s0 = smov [#allocation7]   ;;  %s18_s23 = int_to_ptr.vmem [resolvable:$true] %s17_s23 }
   0x8   :  { %23 = dma.hbm_to_vmem [thread:$0]  %s16_s19, 256, %s18_s23, [#allocation3], %s377_s20, %s377_s20, %s378_s21  }
   0x9   :  { %s44_s26 = sshll.u32 %s380_s0, 4  ;;  %s45_s26 = int_to_ptr.vmem [resolvable:$true] %s44_s26 }
   0xa   :  { %47 = dma.hbm_to_vmem [thread:$0]  %s43_s1, 64, %s45_s26, [#allocation6]  }
   0xb   :  { %370 = dma.done.wait [#allocation3], 256  }
   0xc   :  { %371 = vsyncadd [#allocation3], 4294967040 }
   0xd   :  { %372 = dma.done.wait [#allocation6], 576  }
   0xe   :  { %373 = vsyncadd [#allocation6], 4294966720  ;;  %v65_v0 = vld [vmem:[#allocation5 + $0x18] sm:$0xff]  ;;  %v64_v1 = vld [vmem:[#allocation5 + $0x10] sm:$0xff]  ;;  %vm68_vm0 = vcmask 261120   ;;  %s381_s2 = smov [#allocation8]  }
   0xf   :  { %87 = vmatpush.msra.mxu0 %v65_v0  ;;  %252 = vmatpush.msra.mxu1 %v65_v0  ;;  %v63_v2 = vld [vmem:[#allocation5 + $0x8] sm:$0xff]  ;;  %v62_v3 = vld [vmem:[#allocation5] sm:$0xff]  ;;  %v60_v4 = vld [vmem:[#allocation2] sm:$0xff]  ;;  %s234_s27 = sshll.u32 %s381_s2, 4  ;;  %s236_s30 = sshll.u32 %s455_s3, 4  ;;  %s235_s27 = int_to_ptr.vmem [resolvable:$true] %s234_s27  ;;  %s237_s30 = int_to_ptr.hbm [resolvable:$true] %s236_s30 }
  0x10   :  { %v61_v5 = vld [vmem:[#allocation2 + $0x8] sm:$0xff]  ;;  %v419_v6 = vld [vmem:[#allocation7] sm:$0x7] }
  0x11   :  { %88 = vmatpush.msra.mxu0 %v64_v1  ;;  %253 = vmatpush.msra.mxu1 %v64_v1  ;;  %v67_v7 = vperm.slane %v419_v6, 0 }
  0x13   :  { %89 = vmatpush.msra.mxu0 %v63_v2  ;;  %254 = vmatpush.msra.mxu1 %v63_v2 }
  0x15   :  { %90 = vmatpush.msra.mxu0 %v62_v3  ;;  %255 = vmatpush.msra.mxu1 %v62_v3 }
  0x16   :  { %250 = vmatmul.msk.f32.vlgmr.msra.gmra.mxu0 %vm68_vm0, %v60_v4  ;;  %251 = vmatmul.msk.f32.vlgmr.msra.gmra.mxu1 %vm68_vm0, %v61_v5 }
  0x93   :  { %v92_v8 = vpop.f32.mrf.mxu0  ;;  %v95_v9 = vpop.f32.mrf.mxu1 }
  0x94   :  { %v422_v10 = vadd.f32 %v92_v8, %v67_v7  ;;  %v424_v11 = vadd.f32 %v95_v9, %v67_v7 }
  0x96   :  { %v427_v12 = vmul.f32 0.70710677, %v422_v10  ;;  %v430_v13 = vmul.f32 0.70710677, %v424_v11 }
  0x98   :  { %v102_v14 = vand.u32 2147483647, %v427_v12  ;;  %v103_v15 = vand.u32 2147483647, %v430_v13  ;;  %vm168_vm9 = vcmp.lt.f32.partialorder %v427_v12, 0.0  ;;  %vm169_vm10 = vcmp.lt.f32.partialorder %v430_v13, 0.0 }
  0x9a   :  { %v104_v16 = vmul.f32 0.3275911, %v102_v14  ;;  %v105_v17 = vmul.f32 0.3275911, %v103_v15  ;;  %v156_v37 = vsub.f32 0.0, %v102_v14  ;;  %v157_v40 = vsub.f32 0.0, %v103_v15 }
  0x9c   :  { %v106_v18 = vadd.f32 1.0, %v104_v16  ;;  %v107_v19 = vadd.f32 1.0, %v105_v17  ;;  %v158_v45 = vmul.f32 %v156_v37, %v102_v14  ;;  %v159_v47 = vmul.f32 %v157_v40, %v103_v15 }
  0x9d   :  { %v98_v14 = vmul.f32 0.5, %v422_v10 }
  0x9e   :  { %262 = vrcp.f32 %v106_v18  ;;  %v119_v25 = vand.u32 2147483648, %v106_v18  ;;  %v134_v28 = vand.u32 2147483648, %v107_v19  ;;  %v117_v29 = vand.u32 2147483647, %v106_v18 }
  0x9f   :  { %264 = vrcp.f32 %v107_v19  ;;  %vm128_vm2 = vweird.f32 %v107_v19  ;;  %v132_v31 = vand.u32 2147483647, %v107_v19  ;;  %vm113_vm4 = vweird.f32 %v106_v18 }
  0xa0   :  { %v120_v33 = vor.u32 1.1754944e-38, %v119_v25  ;;  %vm118_vm6 = vcmp.eq.f32.partialorder %v117_v29, 8.507059e+37  ;;  %v135_v36 = vor.u32 1.1754944e-38, %v134_v28  ;;  %v160_v51 = vmul.f32 1.442695, %v158_v45 }
  0xa1   :  { %vm133_vm8 = vcmp.eq.f32.partialorder %v132_v31, 8.507059e+37  ;;  %v162_v53 = vmul.f32 1.442695, %v159_v47 }
  0xa2   :  { %266 = vpow2.f32 %v160_v51 }
  0xa3   :  { %268 = vpow2.f32 %v162_v53 }
  0xa4   :  { %v263_v20 = vpop.eup %262 }
  0xa5   :  { %v265_v21 = vpop.eup %264  ;;  %v109_v22 = vmul.f32 %v263_v20, %v106_v18  ;;  %vm114_vm1 = vweird.f32 %v263_v20 }
  0xa6   :  { %v124_v23 = vmul.f32 %v265_v21, %v107_v19  ;;  %vm129_vm3 = vweird.f32 %v265_v21  ;;  %vm115_vm5 = vmor %vm113_vm4, %vm114_vm1 }
  0xa7   :  { %v110_v24 = vsub.f32 1.0, %v109_v22  ;;  %vm130_vm7 = vmor %vm128_vm2, %vm129_vm3 }
  0xa8   :  { %v125_v26 = vsub.f32 1.0, %v124_v23  ;;  %v267_v63 = vpop.eup %266 }
  0xa9   :  { %v111_v27 = vmul.f32 %v263_v20, %v110_v24  ;;  %v269_v1 = vpop.eup %268 }
  0xaa   :  { %v126_v30 = vmul.f32 %v265_v21, %v125_v26 }
  0xab   :  { %v112_v32 = vadd.f32 %v263_v20, %v111_v27 }
  0xac   :  { %v127_v34 = vadd.f32 %v265_v21, %v126_v30 }
  0xad   :  { %v116_v35 = vsel %vm115_vm5, %v263_v20, %v112_v32  ;;  %v99_v20 = vmul.f32 0.5, %v424_v11 }
  0xae   :  { %v121_v38 = vsel %vm118_vm6, %v120_v33, %v116_v35  ;;  %v131_v39 = vsel %vm130_vm7, %v265_v21, %v127_v34 }
  0xaf   :  { %v138_v41 = vmul.f32 1.0614054, %v121_v38  ;;  %v136_v42 = vsel %vm133_vm8, %v135_v36, %v131_v39 }
  0xb0   :  { %v139_v43 = vmul.f32 1.0614054, %v136_v42 }
  0xb1   :  { %v140_v44 = vadd.f32 -1.4531521, %v138_v41 }
  0xb2   :  { %v141_v46 = vadd.f32 -1.4531521, %v139_v43  ;;  %v222_v43 = vperm.slane %v419_v6, 1 }
  0xb3   :  { %v142_v48 = vmul.f32 %v140_v44, %v121_v38 }
  0xb4   :  { %v143_v49 = vmul.f32 %v141_v46, %v136_v42  ;;  %v225_v46 = vperm.slane %v419_v6, 2 }
  0xb5   :  { %v144_v50 = vadd.f32 1.4214138, %v142_v48 }
  0xb6   :  { %v145_v52 = vadd.f32 1.4214138, %v143_v49 }
  0xb7   :  { %v146_v54 = vmul.f32 %v144_v50, %v121_v38 }
  0xb8   :  { %v147_v55 = vmul.f32 %v145_v52, %v136_v42 }
  0xb9   :  { %v148_v56 = vadd.f32 -0.28449672, %v146_v54 }
  0xba   :  { %v149_v57 = vadd.f32 -0.28449672, %v147_v55 }
  0xbb   :  { %v150_v58 = vmul.f32 %v148_v56, %v121_v38 }
  0xbc   :  { %v151_v59 = vmul.f32 %v149_v57, %v136_v42 }
  0xbd   :  { %v152_v60 = vadd.f32 0.2548296, %v150_v58 }
  0xbe   :  { %v153_v61 = vadd.f32 0.2548296, %v151_v59 }
  0xbf   :  { %v154_v62 = vmul.f32 %v152_v60, %v121_v38 }
  0xc0   :  { %v155_v0 = vmul.f32 %v153_v61, %v136_v42 }
  0xc1   :  { %v164_v2 = vmul.f32 %v267_v63, %v154_v62 }
  0xc2   :  { %v165_v3 = vmul.f32 %v269_v1, %v155_v0 }
  0xc3   :  { %v166_v4 = vsub.f32 1.0, %v164_v2 }
  0xc4   :  { %v167_v5 = vsub.f32 1.0, %v165_v3 }
  0xc5   :  { %v170_v7 = vsub.f32 0.0, %v166_v4 }
  0xc6   :  { %v171_v8 = vsub.f32 0.0, %v167_v5 }
  0xc7   :  { %v172_v9 = vsel %vm168_vm9, %v170_v7, %v166_v4 }
  0xc8   :  { %v174_v15 = vadd.f32 1.0, %v172_v9  ;;  %v173_v16 = vsel %vm169_vm10, %v171_v8, %v167_v5 }
  0xc9   :  { %v175_v19 = vadd.f32 1.0, %v173_v16 }
  0xca   :  { %v176_v17 = vmul.f32 %v174_v15, %v98_v14 }
  0xcb   :  { %v177_v21 = vmul.f32 %v175_v19, %v99_v20 }
  0xcc   :  { %v178_v18 = vsel %vm68_vm0, %v176_v17, 0.0 }
  0xcd   :  { %179 = vadd.xlane.f32.xlu0 %v178_v18  ;;  %v181_v22 = vsel %vm68_vm0, %v177_v21, 0.0 }
  0xd5   :  { %182 = vadd.xlane.f32.xlu0 %v181_v22 }
 0x140   :  { %v180_v12 = vpop.xlane.xlu0 %179 }
 0x141   :  { %v184_v23 = vmul.f32 0.03125, %v180_v12 }
 0x143   :  { %v186_v24 = vsub.f32 %v176_v17, %v184_v23 }
 0x145   :  { %v188_v25 = vmul.f32 %v186_v24, %v186_v24 }
 0x147   :  { %v190_v10 = vsel %vm68_vm0, %v188_v25, 0.0 }
 0x148   :  { %191 = vadd.xlane.f32.xlu1 %v190_v10  ;;  %v183_v13 = vpop.xlane.xlu0 %182 }
 0x149   :  { %v185_v26 = vmul.f32 0.03125, %v183_v13 }
 0x14b   :  { %v187_v27 = vsub.f32 %v177_v21, %v185_v26 }
 0x14d   :  { %v189_v28 = vmul.f32 %v187_v27, %v187_v27 }
 0x14f   :  { %v193_v29 = vsel %vm68_vm0, %v189_v28, 0.0 }
 0x150   :  { %194 = vadd.xlane.f32.xlu1 %v193_v29 }
 0x1bb   :  { %v192_v30 = vpop.xlane.xlu1 %191 }
 0x1bc   :  { %v196_v11 = vmul.f32 0.03125, %v192_v30 }
 0x1be   :  { %v198_v31 = vadd.f32 1e-05, %v196_v11 }
 0x1c0   :  { %270 = vrsqrt.f32 %v198_v31  ;;  %vm206_vm12 = vweird.f32 %v198_v31 }
 0x1c3   :  { %v195_v32 = vpop.xlane.xlu1 %194 }
 0x1c4   :  { %v197_v33 = vmul.f32 0.03125, %v195_v32 }
 0x1c6   :  { %v271_v34 = vpop.eup %270  ;;  %v199_v35 = vadd.f32 1e-05, %v197_v33 }
 0x1c7   :  { %v201_v36 = vmul.f32 %v271_v34, %v198_v31  ;;  %vm207_vm11 = vweird.f32 %v271_v34 }
 0x1c8   :  { %272 = vrsqrt.f32 %v199_v35  ;;  %vm208_vm13 = vmor %vm206_vm12, %vm207_vm11  ;;  %vm216_vm15 = vweird.f32 %v199_v35 }
 0x1c9   :  { %v202_v37 = vmul.f32 %v271_v34, %v201_v36 }
 0x1cb   :  { %v203_v38 = vmul.f32 0.5, %v202_v37 }
 0x1cd   :  { %v204_v39 = vsub.f32 1.5, %v203_v38 }
 0x1ce   :  { %v273_v40 = vpop.eup %272 }
 0x1cf   :  { %v205_v41 = vmul.f32 %v271_v34, %v204_v39  ;;  %v211_v42 = vmul.f32 %v273_v40, %v199_v35  ;;  %vm217_vm14 = vweird.f32 %v273_v40 }
 0x1d0   :  { %vm218_vm1 = vmor %vm216_vm15, %vm217_vm14 }
 0x1d1   :  { %v209_v44 = vsel %vm208_vm13, %v271_v34, %v205_v41  ;;  %v212_v45 = vmul.f32 %v273_v40, %v211_v42 }
 0x1d2   :  { %v220_v47 = vmul.f32 %v209_v44, %v186_v24 }
 0x1d3   :  { %v213_v48 = vmul.f32 0.5, %v212_v45 }
 0x1d4   :  { %v223_v49 = vmul.f32 %v222_v43, %v220_v47 }
 0x1d5   :  { %v214_v50 = vsub.f32 1.5, %v213_v48 }
 0x1d6   :  { %v226_v51 = vadd.f32 %v225_v46, %v223_v49 }
 0x1d7   :  { %v215_v52 = vmul.f32 %v273_v40, %v214_v50 }
 0x1d8   :  { %228 = vst.msk [vmem:[#allocation8] sm:$0xff] %vm68_vm0, %v226_v51 }
 0x1d9   :  { %v219_v53 = vsel %vm218_vm1, %v273_v40, %v215_v52 }
 0x1da   :  { %v221_v54 = vmul.f32 %v219_v53, %v187_v27 }
 0x1dc   :  { %v224_v6 = vmul.f32 %v222_v43, %v221_v54 }
 0x1de   :  { %v227_v55 = vadd.f32 %v225_v46, %v224_v6 }
 0x1e0   :  { %229 = vst.msk [vmem:[#allocation8 + $0x8] sm:$0xff] %vm68_vm0, %v227_v55 }
 0x1e1   :  { %242 = dma.vmem_to_hbm [thread:$0]  %s235_s27, 256, %s237_s30, [#allocation4], %s377_s20, %s377_s20, %s378_s21  }
 0x1e2   :  { %374 = dma.done.wait [#allocation4], 256  }
 0x1e3   :  { %375 = vsyncadd [#allocation4], 4294967040 }
 0x1e4   :  { %247 = vsyncpa [#allocation3], 1 }
 0x1e5   :  { %248 = vsyncpa [#allocation6], 1 }
 0x1e6   :  { %249 = vsyncpa [#allocation4], 1 }

</bundles_post_ra>
